<compile_context>
chip_gen: v5e
topology: v5e:2x2
jax: 0.10.0
libtpu: 0.0.40
codegen_flags: <defaults>
</compile_context>

<pallas_src>
import functools
import math

import jax
import jax.numpy as jnp
from jax import lax
from jax.experimental import pallas as pl
from jax.experimental.pallas import tpu as pltpu


def _round_up(v, m):
    return ((v + m - 1) // m) * m


# ---------------------------------------------------------------------------
# Path A: per-pose DMA gather.  x stays in HBM (memory_space=pl.ANY); labels
# are scalar-prefetched into SMEM; each pose's selected channel row (1, L) is
# DMA'd directly into the lane-dense output block.  Used for large C.
# ---------------------------------------------------------------------------
def _dma_gather_kernel(num_poses, poses_per_block, unroll,
                       labels_ref, x_hbm, o_ref, sem):
    """labels_ref: SMEM int32[num_poses] (pre-clamped in the wrapper)
    x_hbm     : ANY  [num_poses, num_classes, L]
    o_ref     : VMEM [P, L] output block (DMA landing zone -- no staging buf)
    sem       : single DMA completion semaphore shared by all copies."""
    b = pl.program_id(0)
    base = b * poses_per_block
    n_chunks = poses_per_block // unroll     # exact: P % unroll == 0 by construction

    def issue_chunk(blk, carry):
        j0 = blk * unroll
        for u in range(unroll):              # python-level unroll (static)
            j = j0 + u
            # Ragged final block: clamp to the last valid pose.  The duplicated
            # rows land in o_ref rows >= n_valid, which are EXACTLY the rows the
            # boundary writeback clips (invariant: ragged rows == OOB rows), so
            # no stale/garbage data can leak into the output.
            i = jnp.minimum(base + j, num_poses - 1)
            c = labels_ref[i]                # already clamped to [0, C)
            pltpu.make_async_copy(
                x_hbm.at[i, pl.ds(c, 1)],    # (1, L) HBM row at channel labels[i]
                o_ref.at[pl.ds(j, 1)],       # straight into the output block
                sem,
            ).start()
        return carry

    # Issue all per-pose gathers back-to-back; they run concurrently.
    lax.fori_loop(0, n_chunks, issue_chunk, 0)

    def drain_chunk(blk, carry):
        for _ in range(unroll):
            # Wait descriptor only needs the per-copy shape ((1, L)); it must
            # match every issued copy's size for semaphore accounting.
            pltpu.make_async_copy(
                x_hbm.at[0, pl.ds(0, 1)], o_ref.at[pl.ds(0, 1)], sem).wait()
        return carry

    lax.fori_loop(0, n_chunks, drain_chunk, 0)


# ---------------------------------------------------------------------------
# Path B (fast path for small C): stream the whole (P, C, L) slab into VMEM
# with a regular BlockSpec (one big contiguous DMA) and select the labelled
# channel on-core with C-1 lane-dense selects.
# ---------------------------------------------------------------------------
def _slab_select_kernel(num_classes, labels_ref, x_ref, o_ref):
    """labels_ref: VMEM int32[P, 1]   (pre-clamped)
    x_ref     : VMEM [P, C, L]
    o_ref     : VMEM [P, L]"""
    lbl = labels_ref[...]                    # (P, 1)
    out = x_ref[:, 0, :]                     # (P, L) -- label 0 default
    for c in range(1, num_classes):          # unrolled at trace time (C small)
        out = jnp.where(lbl == c, x_ref[:, c, :], out)
    o_ref[...] = out


def pose_post_process(x, labels, boxes_per_image, *,
                      poses_per_block=128,
                      slab_channel_threshold=8,
                      force_path=None):
    """JAX/Pallas equivalent of PosePostProcessor.forward.

    Args:
      x: [num_poses, num_classes, H, W] pose/mask logits (NCHW).
      labels: [num_poses] int class label per pose (concat of per-image labels).
      boxes_per_image: python list of ints, number of boxes per image.
      poses_per_block: poses handled per grid step.
      slab_channel_threshold: use the whole-slab on-core select when
        num_classes <= this (tune per generation: ~2-4 v5e, ~8 v6e, ~16 v7x).
      force_path: None (auto), "dma", or "slab" (testing hook).

    Returns:
      list of arrays, one per image, each [n_i, 1, H, W] (the "pose" field).
    """
    num_poses, num_classes, H, W = x.shape
    assert sum(boxes_per_image) == num_poses
    L = H * W
    itemsize = jnp.dtype(x.dtype).itemsize

    x_flat = x.reshape(num_poses, num_classes, L)        # lane-dense last dim
    # Hoisted out of the kernel: clamp once.  (Out-of-range labels are silently
    # redirected instead of erroring like torch's gather -- defensive choice.)
    labels_i32 = jnp.clip(labels.astype(jnp.int32), 0, num_classes - 1)

    # ---- block-size selection -------------------------------------------
    P = min(poses_per_block, num_poses)
    if num_poses >= 16 and num_poses <= poses_per_block:
        # Single-step grid would leave one v7x TensorCore idle; split into two
        # blocks (divisible by 8 so the (8,128) constraint holds for the
        # ragged final block).  Negligible extra step cost on v5e/v6e.
        P = _round_up(pl.cdiv(num_poses, 2), 8)
    if P < num_poses:
        P = _round_up(P, 8)                  # multi-block => P must be 8-aligned
    grid = (pl.cdiv(num_poses, P),)

    if force_path is not None:
        use_slab = (force_path == "slab")
    else:
        use_slab = num_classes <= slab_channel_threshold

    # ---- VMEM budget ------------------------------------------------------
    if use_slab:
        est_vmem = 2 * (P * num_classes * L * itemsize + P * 4) + 2 * P * L * itemsize
    else:
        est_vmem = 2 * P * L * itemsize      # double-buffered output block only
    vmem_limit = None
    if est_vmem > (12 << 20):
        vmem_limit = min(int(est_vmem * 3 // 2), 64 << 20)

    if use_slab:
        pose_flat = pl.pallas_call(
            functools.partial(_slab_select_kernel, num_classes),
            out_shape=jax.ShapeDtypeStruct((num_poses, L), x.dtype),
            grid_spec=pltpu.PrefetchScalarGridSpec(
                num_scalar_prefetch=0,
                grid=grid,
                in_specs=[
                    pl.BlockSpec((P, 1), lambda b: (b, 0)),                 # labels
                    pl.BlockSpec((P, num_classes, L), lambda b: (b, 0, 0)), # x slab
                ],
                out_specs=pl.BlockSpec((P, L), lambda b: (b, 0)),
            ),
            compiler_params=pltpu.CompilerParams(
                dimension_semantics=("parallel",),
                vmem_limit_bytes=vmem_limit),
            cost_estimate=pl.CostEstimate(
                flops=0, transcendentals=0,
                bytes_accessed=num_poses * (num_classes + 1) * L * itemsize),
        )(labels_i32.reshape(num_poses, 1), x_flat)
    else:
        unroll = math.gcd(P, 8)              # P % unroll == 0 guaranteed
        pose_flat = pl.pallas_call(
            functools.partial(_dma_gather_kernel, num_poses, P, unroll),
            out_shape=jax.ShapeDtypeStruct((num_poses, L), x.dtype),
            grid_spec=pltpu.PrefetchScalarGridSpec(
                num_scalar_prefetch=1,                     # labels -> SMEM
                grid=grid,
                in_specs=[
                    pl.BlockSpec(memory_space=pl.ANY),     # x stays in HBM
                ],
                out_specs=pl.BlockSpec((P, L), lambda b, labels_ref: (b, 0)),
                scratch_shapes=[
                    pltpu.SemaphoreType.DMA(()),           # shared completion sem
                ],
            ),
            compiler_params=pltpu.CompilerParams(
                dimension_semantics=("parallel",),
                vmem_limit_bytes=vmem_limit),
            cost_estimate=pl.CostEstimate(
                flops=0, transcendentals=0,
                bytes_accessed=2 * num_poses * L * itemsize),
        )(labels_i32, x_flat)

    pose_prob = pose_flat.reshape(num_poses, 1, H, W)

    # Glue: mirrors torch `pose_prob.split(boxes_per_image, dim=0)`.
    results = []
    off = 0
    for n in boxes_per_image:
        results.append(pose_prob[off:off + n])
        off += n
    # TODO(synk): BoxList construction / field copying (bbox coords, extra
    # fields) is pure Python bookkeeping with no Pallas equivalent; only the
    # "pose" tensors are returned here.
    return results


if __name__ == "__main__":
    key = jax.random.PRNGKey(0)

    def ref_gather(x, labels):
        return x[jnp.arange(x.shape[0]), labels][:, None]

    def run_and_check(x, labels, boxes_per_image, **kw):
        results = pose_post_process(x, labels, boxes_per_image, **kw)
        results = [jax.block_until_ready(r) for r in results]
        got = jnp.concatenate(results, axis=0)
        ref = ref_gather(x, labels)
        assert got.shape == ref.shape, (got.shape, ref.shape)
        # Pure gather/select -> must be bit-exact.
        assert bool(jnp.array_equal(got, ref)), "mismatch vs reference gather"

    k1, k2, k3, k4 = jax.random.split(key, 4)

    # 1) Small case: 2 images x 2 boxes = 4 poses, 4 classes, 16x16 maps.
    x1 = jax.random.normal(k1, (4, 4, 16, 16), dtype=jnp.float32)
    l1 = jax.random.randint(k2, (4,), 0, 4, dtype=jnp.int32)
    run_and_check(x1, l1, [2, 2])                       # auto -> slab fast path
    run_and_check(x1, l1, [2, 2], force_path="dma")     # forced DMA gather path

    # 2) Larger C + ragged multi-block grid (N=20 -> P=16, grid=2).
    x2 = jax.random.normal(k3, (20, 12, 8, 8), dtype=jnp.float32)
    l2 = jax.random.randint(k4, (20,), 0, 12, dtype=jnp.int32)
    run_and_check(x2, l2, [11, 9])                      # auto -> DMA gather path
    run_and_check(x2, l2, [11, 9], force_path="slab")   # ragged slab path

    print("KERNEL_OK")
</pallas_src>

<mosaic_0001>
module attributes {stable_mosaic.version = 11 : i64} {
  func.func @_slab_select_kernel(%arg0: i32, %arg1: memref<4x1xi32, #tpu.memory_space<vmem>>, %arg2: memref<4x4x256xf32, #tpu.memory_space<vmem>>, %arg3: memref<4x256xf32, #tpu.memory_space<vmem>>) attributes {dimension_semantics = [#tpu.dimension_semantics<parallel>], iteration_bounds = array<i64: 1>, scalar_prefetch = 0 : i64, scratch_operands = 0 : i64, tpu.core_type = #tpu.core_type<tc>, window_params = [{transform_indices = @transform_0, window_bounds = array<i64: 4, 1>}, {transform_indices = @transform_1, window_bounds = array<i64: 4, 4, 256>}, {transform_indices = @transform_2, window_bounds = array<i64: 4, 256>}]} {
    %c0 = arith.constant 0 : index
    %c0_0 = arith.constant 0 : index
    %0 = vector.load %arg1[%c0, %c0_0] : memref<4x1xi32, #tpu.memory_space<vmem>>, vector<4x1xi32>
    %c0_1 = arith.constant 0 : index
    %c0_2 = arith.constant 0 : index
    %c0_3 = arith.constant 0 : index
    %1 = vector.load %arg2[%c0_1, %c0_2, %c0_3] : memref<4x4x256xf32, #tpu.memory_space<vmem>>, vector<4x1x256xf32>
    %2 = vector.shape_cast %1 : vector<4x1x256xf32> to vector<4x256xf32>
    %c1_i32 = arith.constant 1 : i32
    %3 = vector.broadcast %c1_i32 : i32 to vector<4x1xi32>
    %4 = arith.cmpi eq, %0, %3 : vector<4x1xi32>
    %c0_4 = arith.constant 0 : index
    %c1 = arith.constant 1 : index
    %c0_5 = arith.constant 0 : index
    %5 = vector.load %arg2[%c0_4, %c1, %c0_5] : memref<4x4x256xf32, #tpu.memory_space<vmem>>, vector<4x1x256xf32>
    %6 = vector.shape_cast %5 : vector<4x1x256xf32> to vector<4x256xf32>
    %7 = vector.shape_cast %4 : vector<4x1xi1> to vector<4x1xi1>
    %8 = vector.broadcast %7 : vector<4x1xi1> to vector<4x256xi1>
    %9 = arith.select %8, %6, %2 : vector<4x256xi1>, vector<4x256xf32>
    %c2_i32 = arith.constant 2 : i32
    %10 = vector.broadcast %c2_i32 : i32 to vector<4x1xi32>
    %11 = arith.cmpi eq, %0, %10 : vector<4x1xi32>
    %c0_6 = arith.constant 0 : index
    %c2 = arith.constant 2 : index
    %c0_7 = arith.constant 0 : index
    %12 = vector.load %arg2[%c0_6, %c2, %c0_7] : memref<4x4x256xf32, #tpu.memory_space<vmem>>, vector<4x1x256xf32>
    %13 = vector.shape_cast %12 : vector<4x1x256xf32> to vector<4x256xf32>
    %14 = vector.shape_cast %11 : vector<4x1xi1> to vector<4x1xi1>
    %15 = vector.broadcast %14 : vector<4x1xi1> to vector<4x256xi1>
    %16 = arith.select %15, %13, %9 : vector<4x256xi1>, vector<4x256xf32>
    %c3_i32 = arith.constant 3 : i32
    %17 = vector.broadcast %c3_i32 : i32 to vector<4x1xi32>
    %18 = arith.cmpi eq, %0, %17 : vector<4x1xi32>
    %c0_8 = arith.constant 0 : index
    %c3 = arith.constant 3 : index
    %c0_9 = arith.constant 0 : index
    %19 = vector.load %arg2[%c0_8, %c3, %c0_9] : memref<4x4x256xf32, #tpu.memory_space<vmem>>, vector<4x1x256xf32>
    %20 = vector.shape_cast %19 : vector<4x1x256xf32> to vector<4x256xf32>
    %21 = vector.shape_cast %18 : vector<4x1xi1> to vector<4x1xi1>
    %22 = vector.broadcast %21 : vector<4x1xi1> to vector<4x256xi1>
    %23 = arith.select %22, %20, %16 : vector<4x256xi1>, vector<4x256xf32>
    %c0_10 = arith.constant 0 : index
    %c0_11 = arith.constant 0 : index
    %24 = vector.load %arg3[%c0_10, %c0_11] : memref<4x256xf32, #tpu.memory_space<vmem>>, vector<4x256xf32>
    tpu.vector_store %arg3[%c0_10, %c0_11], %23 {strides = array<i32>} : memref<4x256xf32, #tpu.memory_space<vmem>>, vector<4x256xf32>,
    return
  }
  func.func @transform_0(%arg0: i32) -> (i32, i32) {
    %c0_i32 = arith.constant 0 : i32
    %c0_i32_0 = arith.constant 0 : i32
    return %arg0, %c0_i32 : i32, i32
  }
  func.func @transform_1(%arg0: i32) -> (i32, i32, i32) {
    %c0_i32 = arith.constant 0 : i32
    %c0_i32_0 = arith.constant 0 : i32
    %c0_i32_1 = arith.constant 0 : i32
    return %arg0, %c0_i32, %c0_i32_0 : i32, i32, i32
  }
  func.func @transform_2(%arg0: i32) -> (i32, i32) {
    %c0_i32 = arith.constant 0 : i32
    %c0_i32_0 = arith.constant 0 : i32
    return %arg0, %c0_i32 : i32, i32
  }
}

</mosaic_0001>

<bundles_post_ra>
// kernel: tpu_custom_call.1
= control target key start
LH: loop header
LB: loop body
LE: loop exit
PB: predicated region body
PF: predicated region fallthrough
CT: control target
= control target key end

     0   :  { %7 = vsyncpa [#allocation3], 0  ;;  %s256_s0 = inlined_call_operand.vmem [shape: s32[4,1], index: 0, kind: input, shape index: {}]   ;;  %s257_s1 = inlined_call_operand.hbm [shape: f32[4,4,256], index: 1, kind: input, shape index: {}]   ;;  %s258_s2 = inlined_call_operand.hbm [shape: f32[4,256], index: 2, kind: output, shape index: {}]  }
   0x1   :  { %8 = vsyncpa [#allocation4], 0  ;;  %s15_s11 = sshll.u32 %s257_s1, 4  ;;  %s227_s12 = smov [#allocation2]   ;;  %s16_s11 = int_to_ptr.hbm [resolvable:$true] %s15_s11 }
   0x2   :  { %s17_s13 = sshll.u32 %s227_s12, 4  ;;  %s228_s14 = smov 128   ;;  %s18_s13 = int_to_ptr.vmem [resolvable:$true] %s17_s13 }
   0x3   :  { %s229_s15 = smov 8  }
   0x4   :  { %23 = dma.hbm_to_vmem [thread:$0]  %s16_s11, 512, %s18_s13, [#allocation3], %s228_s14, %s228_s14, %s229_s15  }
   0x5   :  { %223 = dma.done.wait [#allocation3], 512  }
   0x6   :  { %224 = vsyncadd [#allocation3], 4294966784  ;;  %v230_v0 = vmov 0   ;;  %v28_v1 = vld [vmem:[%s256_s0] sm:$0xf]  ;;  %s231_s0 = smov [#allocation5]  }
   0x7   :  { %173 = vset.pattern.permute.xlu0 %v230_v0  ;;  %174 = vset.pattern.permute.xlu1 %v230_v0  ;;  %vm36_vm0 = vcmp.eq.s32.totalorder %v28_v1, 1  ;;  %vm113_vm1 = vcmp.eq.s32.totalorder %v28_v1, 3  ;;  %v38_v4 = vld [vmem:[#allocation2 + $0x1] ss:$4 sm:$0x3]  ;;  %vm82_vm2 = vcmp.eq.s32.totalorder %v28_v1, 2 }
   0x8   :  { %v45_v2 = vsel %vm36_vm0, 1, %v230_v0  ;;  %v122_v3 = vsel %vm113_vm1, 1, %v230_v0  ;;  %v40_v5 = vld [vmem:[#allocation2 + $0x9] ss:$4 sm:$0x3]  ;;  %v91_v8 = vsel %vm82_vm2, 1, %v230_v0 }
   0x9   :  { %47 = vperm.xlu0 %173, %v45_v2   ;;  %124 = vperm.xlu1 %174, %v122_v3   ;;  %v42_v6 = vld [vmem:[#allocation2 + $0x11] ss:$4 sm:$0x3]  ;;  %v44_v7 = vld [vmem:[#allocation2 + $0x19] ss:$4 sm:$0x3] }
   0xa   :  { %54 = vst [vmem:[#allocation1] ss:$9 sm:$0xff] %v38_v4  ;;  %v29_v9 = vld [vmem:[#allocation2] ss:$4 sm:$0x3]  ;;  %s156_s1 = sshll.u32 %s231_s0, 4  ;;  %s157_s1 = int_to_ptr.vmem [resolvable:$true] %s156_s1 }
   0xb   :  { %56 = vst [vmem:[#allocation1 + $0x1] ss:$9 sm:$0xff] %v40_v5  ;;  %v31_v10 = vld [vmem:[#allocation2 + $0x8] ss:$4 sm:$0x3]  ;;  %s158_s20 = sshll.u32 %s258_s2, 4  ;;  %s159_s20 = int_to_ptr.hbm [resolvable:$true] %s158_s20 }
   0xc   :  { %58 = vst [vmem:[#allocation1 + $0x2] ss:$9 sm:$0xff] %v42_v6  ;;  %v33_v11 = vld [vmem:[#allocation2 + $0x10] ss:$4 sm:$0x3]  ;;  %vm147_vm6 = vcmask 1043456  }
   0xd   :  { %60 = vst [vmem:[#allocation1 + $0x3] ss:$9 sm:$0xff] %v44_v7  ;;  %v35_v14 = vld [vmem:[#allocation2 + $0x18] ss:$4 sm:$0x3] }
   0xe   :  { %v84_v17 = vld [vmem:[#allocation2 + $0x2] ss:$4 sm:$0x3]  ;;  %v86_v18 = vld [vmem:[#allocation2 + $0xa] ss:$4 sm:$0x3] }
   0xf   :  { %v88_v19 = vld [vmem:[#allocation2 + $0x12] ss:$4 sm:$0x3]  ;;  %v90_v20 = vld [vmem:[#allocation2 + $0x1a] ss:$4 sm:$0x3] }
  0x10   :  { %v115_v21 = vld [vmem:[#allocation2 + $0x3] ss:$4 sm:$0x3]  ;;  %v117_v22 = vld [vmem:[#allocation2 + $0xb] ss:$4 sm:$0x3] }
  0x11   :  { %93 = vperm.xlu0 %173, %v91_v8   ;;  %v119_v25 = vld [vmem:[#allocation2 + $0x13] ss:$4 sm:$0x3]  ;;  %v121_v26 = vld [vmem:[#allocation2 + $0x1b] ss:$4 sm:$0x3] }
  0x14   :  { %v61_v12 = vld [vmem:[#allocation1] sm:$0xff]  ;;  %v62_v13 = vld [vmem:[#allocation1 + $0x9] sm:$0xff] }
  0x15   :  { %69 = vst [vmem:[#allocation1] ss:$9 sm:$0xff] %v29_v9 }
  0x16   :  { %71 = vst [vmem:[#allocation1 + $0x1] ss:$9 sm:$0xff] %v31_v10 }
  0x17   :  { %73 = vst [vmem:[#allocation1 + $0x2] ss:$9 sm:$0xff] %v33_v11 }
  0x18   :  { %75 = vst [vmem:[#allocation1 + $0x3] ss:$9 sm:$0xff] %v35_v14 }
  0x1f   :  { %v76_v15 = vld [vmem:[#allocation1] sm:$0xff]  ;;  %v77_v16 = vld [vmem:[#allocation1 + $0x9] sm:$0xff] }
  0x20   :  { %100 = vst [vmem:[#allocation1] ss:$9 sm:$0xff] %v84_v17 }
  0x21   :  { %102 = vst [vmem:[#allocation1 + $0x1] ss:$9 sm:$0xff] %v86_v18 }
  0x22   :  { %104 = vst [vmem:[#allocation1 + $0x2] ss:$9 sm:$0xff] %v88_v19 }
  0x23   :  { %106 = vst [vmem:[#allocation1 + $0x3] ss:$9 sm:$0xff] %v90_v20 }
  0x2a   :  { %v107_v23 = vld [vmem:[#allocation1] sm:$0xff]  ;;  %v108_v24 = vld [vmem:[#allocation1 + $0x9] sm:$0xff] }
  0x2b   :  { %131 = vst [vmem:[#allocation1] ss:$9 sm:$0xff] %v115_v21 }
  0x2c   :  { %133 = vst [vmem:[#allocation1 + $0x1] ss:$9 sm:$0xff] %v117_v22 }
  0x2d   :  { %135 = vst [vmem:[#allocation1 + $0x2] ss:$9 sm:$0xff] %v119_v25 }
  0x2e   :  { %137 = vst [vmem:[#allocation1 + $0x3] ss:$9 sm:$0xff] %v121_v26 }
  0x35   :  { %v139_v30 = vld [vmem:[#allocation1 + $0x9] sm:$0xff]  ;;  %v138_v35 = vld [vmem:[#allocation1] sm:$0xff] }
  0x7b   :  { %v48_v27 = vpop.permute.xlu0 %47  ;;  %v125_v28 = vpop.permute.xlu1 %124 }
  0x7c   :  { %vm49_vm3 = vcmp.eq.s32.totalorder %v48_v27, 1  ;;  %vm126_vm4 = vcmp.eq.s32.totalorder %v125_v28, 1 }
  0x7d   :  { %v80_v31 = vsel %vm49_vm3, %v61_v12, %v76_v15  ;;  %v81_v32 = vsel %vm49_vm3, %v62_v13, %v77_v16 }
  0x83   :  { %v94_v29 = vpop.permute.xlu0 %93 }
  0x84   :  { %vm95_vm5 = vcmp.eq.s32.totalorder %v94_v29, 1 }
  0x85   :  { %v111_v33 = vsel %vm95_vm5, %v107_v23, %v80_v31  ;;  %v112_v34 = vsel %vm95_vm5, %v108_v24, %v81_v32 }
  0x86   :  { %v143_v36 = vsel %vm126_vm4, %v139_v30, %v112_v34  ;;  %v142_v38 = vsel %vm126_vm4, %v138_v35, %v111_v33 }
  0x87   :  { %v146_v37 = vrot.slane %v143_v36, 4 }
  0x89   :  { %v148_v39 = vsel %vm147_vm6, %v142_v38, %v146_v37 }
  0x8a   :  { %150 = vst [vmem:[#allocation5] sm:$0xff] %v148_v39 }
  0x8b   :  { %161 = dma.vmem_to_hbm [thread:$0]  %s157_s1, 128, %s159_s20, [#allocation4]  }
  0x8c   :  { %225 = dma.done.wait [#allocation4], 128  }
  0x8d   :  { %226 = vsyncadd [#allocation4], 4294967168 }
  0x8e   :  { %166 = vsyncpa [#allocation3], 1 }
  0x8f   :  { %167 = vsyncpa [#allocation4], 1 }

</bundles_post_ra>
